<compile_context>
chip_gen: v6e
topology: v6e:2x2x1
jax: 0.10.0
libtpu: 0.0.40
codegen_flags: <defaults>
</compile_context>

<pallas_src>
import jax
import jax.numpy as jnp
from jax.experimental import pallas as pl
from jax.experimental.pallas import tpu as pltpu


def actor_kernel(s_ref, w1_ref, b1_ref, w2_ref, b2_ref, out_ref):
    # ---- Layer 1: Linear(4 -> H) + ReLU  (VPU broadcast-FMA, no MXU) ----
    s = s_ref[...].astype(jnp.float32)        # (tile_B, 4)
    w1 = w1_ref[...].astype(jnp.float32)      # (4, H)
    h = b1_ref[...].astype(jnp.float32)       # (1, H) -> broadcasts over rows
    for k in range(w1.shape[0]):              # K = 4, fully unrolled
        h = h + s[:, k:k + 1] * w1[k:k + 1, :]
    h = jnp.maximum(h, 0.0)                   # ReLU on VPU

    # ---- Layer 2: Linear(H -> 2)  (K = 64 contraction on MXU, f32 acc) ----
    logits = jnp.dot(h, w2_ref[...].astype(jnp.float32),
                     preferred_element_type=jnp.float32)
    logits = logits + b2_ref[...].astype(jnp.float32)
    out_ref[...] = logits.astype(out_ref.dtype)   # single store per grid step


def _round_up(x, m):
    return (x + m - 1) // m * m


def actor_net_forward(s, w1, b1, w2, b2, *, tile_b=2048):
    """Forward pass of ActorNet.

    s: [B, 4] (or [4] for a single state), same layout as PyTorch nn.Linear
    input.  Weights are stored pre-transposed as [in_features, out_features].
    """
    squeeze = s.ndim == 1
    if squeeze:
        s = s[None, :]

    B, in_dim = s.shape
    out_dim = w2.shape[1]

    # Batch tile: multiple of 8 (sublane), capped at the (padded) batch size.
    tile_b = min(_round_up(tile_b, 8), _round_up(B, 8))
    padded_b = _round_up(B, tile_b)
    if padded_b != B:
        s = jnp.pad(s, ((0, padded_b - B), (0, 0)))  # zero rows are harmless
    grid = (padded_b // tile_b,)

    # Weights/biases: constant index_map -> VMEM-resident, no re-DMA per step.
    const = lambda shape: pl.BlockSpec(shape, lambda i: (0,) * len(shape))

    out = pl.pallas_call(
        actor_kernel,
        out_shape=jax.ShapeDtypeStruct((padded_b, out_dim), s.dtype),
        grid=grid,
        in_specs=[
            pl.BlockSpec((tile_b, in_dim), lambda i: (i, 0)),
            const(w1.shape),
            const(b1.shape),
            const(w2.shape),
            const(b2.shape),
        ],
        out_specs=pl.BlockSpec((tile_b, out_dim), lambda i: (i, 0)),
        compiler_params=pltpu.CompilerParams(
            dimension_semantics=("parallel",)),  # v7x: shard batch over 2 TCs
    )(s, w1, b1, w2, b2)
    out = out[:B]
    return out[0] if squeeze else out


def init_params(key, in_dim=4, hidden_dim=64, out_dim=2, dtype=jnp.float32):
    # Deterministic init mimicking PyTorch nn.Linear default:
    # U(-1/sqrt(fan_in), 1/sqrt(fan_in)).  Weights stored as [in, out].
    k1, k2, k3, k4 = jax.random.split(key, 4)
    bound1 = 1.0 / jnp.sqrt(in_dim)
    bound2 = 1.0 / jnp.sqrt(hidden_dim)
    w1 = jax.random.uniform(k1, (in_dim, hidden_dim), dtype, -bound1, bound1)
    b1 = jax.random.uniform(k2, (1, hidden_dim), dtype, -bound1, bound1)
    w2 = jax.random.uniform(k3, (hidden_dim, out_dim), dtype, -bound2, bound2)
    b2 = jax.random.uniform(k4, (1, out_dim), dtype, -bound2, bound2)
    return w1, b1, w2, b2


def actor_net_ref(s, w1, b1, w2, b2):
    h = jnp.maximum(s @ w1 + b1, 0.0)
    return h @ w2 + b2


if __name__ == "__main__":
    key = jax.random.PRNGKey(0)
    k_s1, k_s2, k_s3, k_p = jax.random.split(key, 4)

    IN, HID, OUT = 4, 64, 2
    w1, b1, w2, b2 = init_params(k_p, IN, HID, OUT)

    # Case 1: tiny batch (typical PPO step), single grid step.
    B1 = 8
    s1 = jax.random.normal(k_s1, (B1, IN), jnp.float32)
    out1 = jax.block_until_ready(actor_net_forward(s1, w1, b1, w2, b2))
    ref1 = actor_net_ref(s1, w1, b1, w2, b2)
    assert out1.shape == (B1, OUT)
    assert jnp.allclose(out1, ref1, atol=1e-5, rtol=1e-5), "mismatch (B=8)"

    # Case 2: non-multiple batch with a small tile -> exercises the batch grid
    # (padding + multi-step pipelined path).
    B2 = 200
    s2 = jax.random.normal(k_s2, (B2, IN), jnp.float32)
    out2 = jax.block_until_ready(actor_net_forward(s2, w1, b1, w2, b2, tile_b=64))
    ref2 = actor_net_ref(s2, w1, b1, w2, b2)
    assert out2.shape == (B2, OUT)
    assert jnp.allclose(out2, ref2, atol=1e-5, rtol=1e-5), "mismatch (B=200)"

    # Case 3: single un-batched state (PPO action-selection path).
    s3 = jax.random.normal(k_s3, (IN,), jnp.float32)
    out3 = jax.block_until_ready(actor_net_forward(s3, w1, b1, w2, b2))
    ref3 = actor_net_ref(s3[None, :], w1, b1, w2, b2)[0]
    assert out3.shape == (OUT,)
    assert jnp.allclose(out3, ref3, atol=1e-5, rtol=1e-5), "mismatch (B=1, 1-D)"

    print("KERNEL_OK")
</pallas_src>

<mosaic_0001>
module attributes {stable_mosaic.version = 11 : i64} {
  func.func @actor_kernel(%arg0: i32, %arg1: memref<8x4xf32, #tpu.memory_space<vmem>>, %arg2: memref<4x64xf32, #tpu.memory_space<vmem>>, %arg3: memref<1x64xf32, #tpu.memory_space<vmem>>, %arg4: memref<64x2xf32, #tpu.memory_space<vmem>>, %arg5: memref<1x2xf32, #tpu.memory_space<vmem>>, %arg6: memref<8x2xf32, #tpu.memory_space<vmem>>) attributes {dimension_semantics = [#tpu.dimension_semantics<parallel>], iteration_bounds = array<i64: 1>, scalar_prefetch = 0 : i64, scratch_operands = 0 : i64, tpu.core_type = #tpu.core_type<tc>, window_params = [{transform_indices = @transform_0, window_bounds = array<i64: 8, 4>}, {pipeline_mode = #tpu.pipeline_mode<synchronous>, transform_indices = @transform_1, window_bounds = array<i64: 4, 64>}, {pipeline_mode = #tpu.pipeline_mode<synchronous>, transform_indices = @transform_2, window_bounds = array<i64: 1, 64>}, {pipeline_mode = #tpu.pipeline_mode<synchronous>, transform_indices = @transform_3, window_bounds = array<i64: 64, 2>}, {pipeline_mode = #tpu.pipeline_mode<synchronous>, transform_indices = @transform_4, window_bounds = array<i64: 1, 2>}, {transform_indices = @transform_5, window_bounds = array<i64: 8, 2>}]} {
    %c0 = arith.constant 0 : index
    %c0_0 = arith.constant 0 : index
    %0 = vector.load %arg1[%c0, %c0_0] : memref<8x4xf32, #tpu.memory_space<vmem>>, vector<8x4xf32>
    %c0_1 = arith.constant 0 : index
    %c0_2 = arith.constant 0 : index
    %1 = vector.load %arg2[%c0_1, %c0_2] : memref<4x64xf32, #tpu.memory_space<vmem>>, vector<4x64xf32>
    %c0_3 = arith.constant 0 : index
    %c0_4 = arith.constant 0 : index
    %2 = vector.load %arg3[%c0_3, %c0_4] : memref<1x64xf32, #tpu.memory_space<vmem>>, vector<1x64xf32>
    %3 = vector.extract_strided_slice %0 {offsets = [0, 0], sizes = [8, 1], strides = [1, 1]} : vector<8x4xf32> to vector<8x1xf32>
    %4 = vector.extract_strided_slice %1 {offsets = [0, 0], sizes = [1, 64], strides = [1, 1]} : vector<4x64xf32> to vector<1x64xf32>
    %5 = vector.broadcast %3 : vector<8x1xf32> to vector<8x64xf32>
    %6 = vector.broadcast %4 : vector<1x64xf32> to vector<8x64xf32>
    %7 = arith.mulf %5, %6 : vector<8x64xf32>
    %8 = vector.broadcast %2 : vector<1x64xf32> to vector<8x64xf32>
    %9 = arith.addf %8, %7 : vector<8x64xf32>
    %10 = vector.extract_strided_slice %0 {offsets = [0, 1], sizes = [8, 1], strides = [1, 1]} : vector<8x4xf32> to vector<8x1xf32>
    %11 = vector.extract_strided_slice %1 {offsets = [1, 0], sizes = [1, 64], strides = [1, 1]} : vector<4x64xf32> to vector<1x64xf32>
    %12 = vector.broadcast %10 : vector<8x1xf32> to vector<8x64xf32>
    %13 = vector.broadcast %11 : vector<1x64xf32> to vector<8x64xf32>
    %14 = arith.mulf %12, %13 : vector<8x64xf32>
    %15 = arith.addf %9, %14 : vector<8x64xf32>
    %16 = vector.extract_strided_slice %0 {offsets = [0, 2], sizes = [8, 1], strides = [1, 1]} : vector<8x4xf32> to vector<8x1xf32>
    %17 = vector.extract_strided_slice %1 {offsets = [2, 0], sizes = [1, 64], strides = [1, 1]} : vector<4x64xf32> to vector<1x64xf32>
    %18 = vector.broadcast %16 : vector<8x1xf32> to vector<8x64xf32>
    %19 = vector.broadcast %17 : vector<1x64xf32> to vector<8x64xf32>
    %20 = arith.mulf %18, %19 : vector<8x64xf32>
    %21 = arith.addf %15, %20 : vector<8x64xf32>
    %22 = vector.extract_strided_slice %0 {offsets = [0, 3], sizes = [8, 1], strides = [1, 1]} : vector<8x4xf32> to vector<8x1xf32>
    %23 = vector.extract_strided_slice %1 {offsets = [3, 0], sizes = [1, 64], strides = [1, 1]} : vector<4x64xf32> to vector<1x64xf32>
    %24 = vector.broadcast %22 : vector<8x1xf32> to vector<8x64xf32>
    %25 = vector.broadcast %23 : vector<1x64xf32> to vector<8x64xf32>
    %26 = arith.mulf %24, %25 : vector<8x64xf32>
    %27 = arith.addf %21, %26 : vector<8x64xf32>
    %cst = arith.constant 0.000000e+00 : f32
    %28 = vector.broadcast %cst : f32 to vector<8x64xf32>
    %29 = arith.maximumf %27, %28 : vector<8x64xf32>
    %c0_5 = arith.constant 0 : index
    %c0_6 = arith.constant 0 : index
    %30 = vector.load %arg4[%c0_5, %c0_6] : memref<64x2xf32, #tpu.memory_space<vmem>>, vector<64x2xf32>
    %cst_7 = arith.constant dense<0.000000e+00> : vector<8x2xf32>
    %31 = tpu.matmul %29, %30, %cst_7 {dimension_numbers = #tpu.dot_dimension_numbers<[1], [0], [0], [1], [0, 0, 1, 1], [], []>} : vector<8x64xf32>, vector<64x2xf32>, vector<8x2xf32> -> vector<8x2xf32>
    %c0_8 = arith.constant 0 : index
    %c0_9 = arith.constant 0 : index
    %32 = vector.load %arg5[%c0_8, %c0_9] : memref<1x2xf32, #tpu.memory_space<vmem>>, vector<1x2xf32>
    %33 = vector.broadcast %32 : vector<1x2xf32> to vector<8x2xf32>
    %34 = arith.addf %31, %33 : vector<8x2xf32>
    %c0_10 = arith.constant 0 : index
    %c0_11 = arith.constant 0 : index
    %35 = vector.load %arg6[%c0_10, %c0_11] : memref<8x2xf32, #tpu.memory_space<vmem>>, vector<8x2xf32>
    tpu.vector_store %arg6[%c0_10, %c0_11], %34 {strides = array<i32>} : memref<8x2xf32, #tpu.memory_space<vmem>>, vector<8x2xf32>,
    return
  }
  func.func @transform_0(%arg0: i32) -> (i32, i32) {
    %c0_i32 = arith.constant 0 : i32
    %c0_i32_0 = arith.constant 0 : i32
    return %arg0, %c0_i32 : i32, i32
  }
  func.func @transform_1(%arg0: i32) -> (i32, i32) {
    %c0_i32 = arith.constant 0 : i32
    %c0_i32_0 = arith.constant 0 : i32
    %c0_i32_1 = arith.constant 0 : i32
    return %c0_i32, %c0_i32_0 : i32, i32
  }
  func.func @transform_2(%arg0: i32) -> (i32, i32) {
    %c0_i32 = arith.constant 0 : i32
    %c0_i32_0 = arith.constant 0 : i32
    %c0_i32_1 = arith.constant 0 : i32
    return %c0_i32, %c0_i32_0 : i32, i32
  }
  func.func @transform_3(%arg0: i32) -> (i32, i32) {
    %c0_i32 = arith.constant 0 : i32
    %c0_i32_0 = arith.constant 0 : i32
    %c0_i32_1 = arith.constant 0 : i32
    return %c0_i32, %c0_i32_0 : i32, i32
  }
  func.func @transform_4(%arg0: i32) -> (i32, i32) {
    %c0_i32 = arith.constant 0 : i32
    %c0_i32_0 = arith.constant 0 : i32
    %c0_i32_1 = arith.constant 0 : i32
    return %c0_i32, %c0_i32_0 : i32, i32
  }
  func.func @transform_5(%arg0: i32) -> (i32, i32) {
    %c0_i32 = arith.constant 0 : i32
    %c0_i32_0 = arith.constant 0 : i32
    return %arg0, %c0_i32 : i32, i32
  }
}

</mosaic_0001>

<bundles_post_ra>
// kernel: tpu_custom_call.1
= control target key start
LH: loop header
LB: loop body
LE: loop exit
PB: predicated region body
PF: predicated region fallthrough
CT: control target
= control target key end

     0   :  { %v208_v0 = vmov 0   ;;  %v209_v2 = vmov 2   ;;  %v210_v4 = vmov 0.0   ;;  %v211_v6 = vmov 1   ;;  %s283_s0 = inlined_call_operand.vmem [shape: f32[8,4], index: 0, kind: input, shape index: {}]   ;;  %s284_s3 = inlined_call_operand.vmem [shape: f32[64,2], index: 3, kind: input, shape index: {}]   ;;  %s285_s1 = inlined_call_operand.vmem [shape: f32[4,64], index: 1, kind: input, shape index: {}]   ;;  %s286_s2 = inlined_call_operand.vmem [shape: f32[1,64], index: 2, kind: input, shape index: {}]   ;;  %s287_s4 = inlined_call_operand.vmem [shape: f32[1,2], index: 4, kind: input, shape index: {}]   ;;  %s288_s5 = inlined_call_operand.vmem [shape: f32[8,2], index: 5, kind: output, shape index: {}]  }
   0x1   :  { %203 = vset.pattern.permute.xlu0 %v208_v0  ;;  %v20_v1 = vld [vmem:[%s283_s0] sm:$0xff]  ;;  %205 = vset.pattern.permute.xlu1 %v209_v2  ;;  %v78_v3 = vld [vmem:[%s284_s3 + $0x38] sm:$0xff]  ;;  %v77_v5 = vld [vmem:[%s284_s3 + $0x30] sm:$0xff]  ;;  %v212_v7 = vmov 3   ;;  %vm213_vm0 = vmmov 0   ;;  %v28_v14 = vlaneseq  ;;  %vm86_vm1 = vcmask 523264  }
   0x2   :  { %25 = vperm.xlu0 %203, %v20_v1   ;;  %51 = vperm.xlu1 %205, %v20_v1   ;;  %v76_v8 = vld [vmem:[%s284_s3 + $0x28] sm:$0xff]  ;;  %v75_v9 = vld [vmem:[%s284_s3 + $0x20] sm:$0xff]  ;;  %v74_v10 = vld [vmem:[%s284_s3 + $0x18] sm:$0xff]  ;;  %vm160_vm2 = vcmask 15360  }
   0x3   :  { %178 = vmatprep.subr.mxu0 %v210_v4  ;;  %194 = vmatprep.mubr.msk.f32.mxu0 %vm213_vm0, %v210_v4  ;;  %v73_v11 = vld [vmem:[%s284_s3 + $0x10] sm:$0xff]  ;;  %v72_v12 = vld [vmem:[%s284_s3 + $0x8] sm:$0xff]  ;;  %v71_v13 = vld [vmem:[%s284_s3] sm:$0xff]  ;;  %v29_v15 = vshrl.u32 %v28_v14, 7 }
   0x4   :  { %179 = vmatpush3.msra.mxu0 %v78_v3  ;;  %v21_v17 = vld [vmem:[%s285_s1] sm:$0xf] }
   0x5   :  { %180 = vmatprep.subr.mxu0 %v210_v4  ;;  %v30_v16 = vsub.s32 0, %v29_v15  ;;  %v46_v19 = vsub.s32 1, %v29_v15  ;;  %v56_v21 = vsub.s32 2, %v29_v15  ;;  %v66_v23 = vsub.s32 3, %v29_v15  ;;  %v166_v26 = vld [vmem:[%s286_s2] ss:$0 sm:$0xff] }
   0x6   :  { %204 = vset.pattern.permute.xlu0 %v211_v6  ;;  %206 = vset.pattern.permute.xlu1 %v212_v7  ;;  %v167_v39 = vld [vmem:[%s287_s4] ss:$0 sm:$0xff] }
   0x7   :  { %41 = vperm.xlu0 %204, %v20_v1   ;;  %61 = vperm.xlu1 %206, %v20_v1   ;;  %v31_v18 = vrot.slane %v21_v17, %v30_v16  ;;  %v47_v25 = vrot.slane %v21_v17, %v46_v19  ;;  %v57_v27 = vrot.slane %v21_v17, %v56_v21 }
   0x8   :  { %181 = vmatpush3.msra.mxu0 %v77_v5  ;;  %v67_v28 = vrot.slane %v21_v17, %v66_v23 }
   0x9   :  { %182 = vmatprep.subr.mxu0 %v210_v4 }
   0xa   :  { %183 = vmatpush3.msra.mxu0 %v76_v8 }
   0xb   :  { %184 = vmatprep.subr.mxu0 %v210_v4  ;;  %207 = vset.pattern.permute.xlu0 %v212_v7 }
   0xc   :  { %185 = vmatpush3.msra.mxu0 %v75_v9 }
   0xd   :  { %186 = vmatprep.subr.mxu0 %v210_v4 }
   0xe   :  { %187 = vmatpush3.msra.mxu0 %v74_v10 }
   0xf   :  { %188 = vmatprep.subr.mxu0 %v210_v4 }
  0x10   :  { %189 = vmatpush3.msra.mxu0 %v73_v11 }
  0x11   :  { %190 = vmatprep.subr.mxu0 %v210_v4 }
  0x12   :  { %191 = vmatpush3.msra.mxu0 %v72_v12 }
  0x13   :  { %192 = vmatprep.subr.mxu0 %v210_v4 }
  0x14   :  { %193 = vmatpush3.msra.mxu0 %v71_v13 }
  0x7d   :  { %v26_v20 = vpop.permute.xlu0 %25  ;;  %v52_v22 = vpop.permute.xlu1 %51 }
  0x7e   :  { %v32_v24 = vmul.f32 %v31_v18, %v26_v20  ;;  %v58_v33 = vmul.f32 %v57_v27, %v52_v22 }
  0x80   :  { %v39_v31 = vadd.f32 %v166_v26, %v32_v24 }
  0x82   :  { %v42_v29 = vpop.permute.xlu0 %41  ;;  %v62_v30 = vpop.permute.xlu1 %61 }
  0x83   :  { %v48_v32 = vmul.f32 %v47_v25, %v42_v29  ;;  %v68_v35 = vmul.f32 %v67_v28, %v62_v30 }
  0x85   :  { %v49_v34 = vadd.f32 %v48_v32, %v39_v31 }
  0x87   :  { %v59_v36 = vadd.f32 %v58_v33, %v49_v34 }
  0x89   :  { %v69_v37 = vadd.f32 %v68_v35, %v59_v36 }
  0x8b   :  { %v70_v38 = vmax.f32 %v69_v37, 0.0 }
  0x8d   :  { %195 = vmatmul.mubr.msk.f32.vlgmr.msra.gmra.mxu0 %vm86_vm1, %v70_v38 }
 0x14d   :  { %v156_v40 = vpop.f32.mrf.mxu0 }
 0x14e   :  { %v157_v41 = vadd.f32 %v167_v39, %v156_v40 }
 0x14f   :  { %v196_v42 = vpop.f32.mrf.mxu0 }
 0x150   :  { %161 = vst.msk [vmem:[%s288_s5] sm:$0xff] %vm160_vm2, %v157_v41 }

</bundles_post_ra>
